<compile_context>
chip_gen: v7x
topology: tpu7x:2x2x1
jax: 0.10.0
libtpu: 0.0.40
codegen_flags: <defaults>
</compile_context>

<pallas_src>
import math

import jax
import jax.numpy as jnp
from jax.experimental import pallas as pl
from jax.experimental.pallas import tpu as pltpu


def _lambda_train_kernel(x_ref, w_ref, b_ref, eps_ref, out_ref):
    # x: (TB, H); w: (H, 2L); b: (1, 2L); eps: (TB, L); out: (TB, 3L)
    L = eps_ref.shape[-1]
    # Fused mean/logvar matmul on the MXU, f32 accumulation; bias broadcasts.
    mv = jnp.dot(x_ref[...], w_ref[...],
                 preferred_element_type=jnp.float32) + b_ref[...]      # (TB, 2L)
    mean = mv[:, :L]
    logvar = mv[:, L:]
    std = jnp.exp(0.5 * logvar)                                        # EUP
    z = eps_ref[...] * std + mean                                      # VPU
    # Single lane-dense store: [z | mean | logvar].
    out_ref[...] = jnp.concatenate([z, mv], axis=-1).astype(out_ref.dtype)


def _lambda_eval_kernel(x_ref, wm_ref, bm_ref, mean_ref):
    # Eval path: mean only (no logvar matmul, no exp, no eps).
    mean_ref[...] = (
        jnp.dot(x_ref[...], wm_ref[...], preferred_element_type=jnp.float32)
        + bm_ref[...]
    ).astype(mean_ref.dtype)


def _pick_tile_b(B, H, L, stream_budget_bytes=24 << 20):
    """Largest batch tile (<=512, multiple of 8, divides B) whose
    double-buffered f32 streams (x, eps, fused output) fit the budget."""
    for cand in (512, 256, 128, 64, 32, 16, 8):
        if B % cand:
            continue
        stream_bytes = 2 * 4 * cand * (H + L + 3 * L)   # 2x double buffer, f32
        if stream_bytes <= stream_budget_bytes:
            return cand
    return B   # tiny / odd batch: single block


def _compiler_params(tile_b, H, L):
    # Streams (double-buffered) + resident fused weights/biases + headroom.
    computed = 2 * (2 * 4 * tile_b * (H + 4 * L)) + 2 * 4 * (H * 2 * L + 2 * L)
    vmem_limit = int(min(max(computed + (4 << 20), 8 << 20), 32 << 20))
    return pltpu.CompilerParams(
        dimension_semantics=("parallel",),     # v7x: shard batch tiles over 2 TCs
        vmem_limit_bytes=vmem_limit)


def lambda_forward(x, wm, bm, wv, bv, eps=None, *, training=True):
    """x: (B, H); wm/wv: (H, L) (pre-transposed); bm/bv: (1, L); eps: (B, L).

    training=True  -> (z, mean, logvar)
    training=False -> mean
    """
    B, H = x.shape
    L = wm.shape[1]
    tile_b = _pick_tile_b(B, H, L)
    grid = (pl.cdiv(B, tile_b),)
    params = _compiler_params(tile_b, H, L)

    def resident(shape):
        return pl.BlockSpec(shape, lambda i: (0, 0))   # weights stay in VMEM

    if training:
        if eps is None:
            raise ValueError("training=True requires eps of shape (B, L)")
        # Fuse the two Linear layers into one (H, 2L) weight / (1, 2L) bias.
        w = jnp.concatenate([wm, wv], axis=1)
        b = jnp.concatenate([bm, bv], axis=1)
        out = pl.pallas_call(
            _lambda_train_kernel,
            out_shape=jax.ShapeDtypeStruct((B, 3 * L), jnp.float32),
            grid=grid,
            in_specs=[
                pl.BlockSpec((tile_b, H), lambda i: (i, 0)),   # x (pipelined)
                resident((H, 2 * L)),                          # fused W
                resident((1, 2 * L)),                          # fused b
                pl.BlockSpec((tile_b, L), lambda i: (i, 0)),   # eps (pipelined)
            ],
            out_specs=pl.BlockSpec((tile_b, 3 * L), lambda i: (i, 0)),
            compiler_params=params,
        )(x, w, b, eps)
        z = out[:, :L]
        mean = out[:, L:2 * L]
        logvar = out[:, 2 * L:]
        return z, mean, logvar

    # Eval: mean-only kernel (half the MXU work, no exp, no eps, 1 output).
    mean = pl.pallas_call(
        _lambda_eval_kernel,
        out_shape=jax.ShapeDtypeStruct((B, L), jnp.float32),
        grid=grid,
        in_specs=[
            pl.BlockSpec((tile_b, H), lambda i: (i, 0)),
            resident((H, L)),
            resident((1, L)),
        ],
        out_specs=pl.BlockSpec((tile_b, L), lambda i: (i, 0)),
        compiler_params=params,
    )(x, wm, bm)
    return mean


def _xavier_uniform(key, fan_in, fan_out):
    # nn.init.xavier_uniform_ on a (out, in) weight, stored transposed (in, out)
    # so the kernel computes x @ W directly.
    bound = math.sqrt(6.0 / (fan_in + fan_out))
    return jax.random.uniform(key, (fan_in, fan_out), jnp.float32,
                              minval=-bound, maxval=bound)


def _linear_bias(key, fan_in, fan_out):
    # PyTorch Linear default bias init: U(-1/sqrt(fan_in), 1/sqrt(fan_in)).
    bound = 1.0 / math.sqrt(fan_in)
    return jax.random.uniform(key, (1, fan_out), jnp.float32,
                              minval=-bound, maxval=bound)


if __name__ == "__main__":
    hidden_size = 32
    latent_length = 16
    batch = 8

    key = jax.random.PRNGKey(0)
    k_x, k_wm, k_bm, k_wv, k_bv, k_eps = jax.random.split(key, 6)

    x = jax.random.normal(k_x, (batch, hidden_size), jnp.float32)
    wm = _xavier_uniform(k_wm, hidden_size, latent_length)
    bm = _linear_bias(k_bm, hidden_size, latent_length)
    wv = _xavier_uniform(k_wv, hidden_size, latent_length)
    bv = _linear_bias(k_bv, hidden_size, latent_length)
    eps = jax.random.normal(k_eps, (batch, latent_length), jnp.float32)

    # Training mode.
    z, mean, logvar = lambda_forward(x, wm, bm, wv, bv, eps, training=True)
    jax.block_until_ready((z, mean, logvar))

    # Pure-JAX reference check.
    mean_ref = x @ wm + bm
    logvar_ref = x @ wv + bv
    z_ref = eps * jnp.exp(0.5 * logvar_ref) + mean_ref
    assert jnp.allclose(mean, mean_ref, atol=1e-5, rtol=1e-5)
    assert jnp.allclose(logvar, logvar_ref, atol=1e-5, rtol=1e-5)
    assert jnp.allclose(z, z_ref, atol=1e-5, rtol=1e-5)

    # Eval mode (mean-only kernel, no eps needed).
    m_eval = lambda_forward(x, wm, bm, wv, bv, training=False)
    jax.block_until_ready(m_eval)
    assert jnp.allclose(m_eval, mean_ref, atol=1e-5, rtol=1e-5)

    print("KERNEL_OK")
</pallas_src>

<mosaic_0001>
module attributes {stable_mosaic.version = 11 : i64} {
  func.func @_lambda_train_kernel(%arg0: i32, %arg1: memref<8x32xf32, #tpu.memory_space<vmem>>, %arg2: memref<32x32xf32, #tpu.memory_space<vmem>>, %arg3: memref<1x32xf32, #tpu.memory_space<vmem>>, %arg4: memref<8x16xf32, #tpu.memory_space<vmem>>, %arg5: memref<8x48xf32, #tpu.memory_space<vmem>>) attributes {dimension_semantics = [#tpu.dimension_semantics<parallel>], iteration_bounds = array<i64: 1>, scalar_prefetch = 0 : i64, scratch_operands = 0 : i64, tpu.core_type = #tpu.core_type<tc>, window_params = [{transform_indices = @transform_0, window_bounds = array<i64: 8, 32>}, {pipeline_mode = #tpu.pipeline_mode<synchronous>, transform_indices = @transform_1, window_bounds = array<i64: 32, 32>}, {pipeline_mode = #tpu.pipeline_mode<synchronous>, transform_indices = @transform_2, window_bounds = array<i64: 1, 32>}, {transform_indices = @transform_3, window_bounds = array<i64: 8, 16>}, {transform_indices = @transform_4, window_bounds = array<i64: 8, 48>}]} {
    %c0 = arith.constant 0 : index
    %c0_0 = arith.constant 0 : index
    %0 = vector.load %arg1[%c0, %c0_0] : memref<8x32xf32, #tpu.memory_space<vmem>>, vector<8x32xf32>
    %c0_1 = arith.constant 0 : index
    %c0_2 = arith.constant 0 : index
    %1 = vector.load %arg2[%c0_1, %c0_2] : memref<32x32xf32, #tpu.memory_space<vmem>>, vector<32x32xf32>
    %cst = arith.constant dense<0.000000e+00> : vector<8x32xf32>
    %2 = tpu.matmul %0, %1, %cst {dimension_numbers = #tpu.dot_dimension_numbers<[1], [0], [0], [1], [0, 0, 1, 1], [], []>} : vector<8x32xf32>, vector<32x32xf32>, vector<8x32xf32> -> vector<8x32xf32>
    %c0_3 = arith.constant 0 : index
    %c0_4 = arith.constant 0 : index
    %3 = vector.load %arg3[%c0_3, %c0_4] : memref<1x32xf32, #tpu.memory_space<vmem>>, vector<1x32xf32>
    %4 = vector.broadcast %3 : vector<1x32xf32> to vector<8x32xf32>
    %5 = arith.addf %2, %4 : vector<8x32xf32>
    %6 = vector.extract_strided_slice %5 {offsets = [0, 0], sizes = [8, 16], strides = [1, 1]} : vector<8x32xf32> to vector<8x16xf32>
    %7 = vector.extract_strided_slice %5 {offsets = [0, 16], sizes = [8, 16], strides = [1, 1]} : vector<8x32xf32> to vector<8x16xf32>
    %cst_5 = arith.constant 5.000000e-01 : f32
    %8 = vector.broadcast %cst_5 : f32 to vector<8x16xf32>
    %9 = arith.mulf %8, %7 : vector<8x16xf32>
    %10 = math.exp %9 : vector<8x16xf32>
    %c0_6 = arith.constant 0 : index
    %c0_7 = arith.constant 0 : index
    %11 = vector.load %arg4[%c0_6, %c0_7] : memref<8x16xf32, #tpu.memory_space<vmem>>, vector<8x16xf32>
    %12 = arith.mulf %11, %10 : vector<8x16xf32>
    %13 = arith.addf %12, %6 : vector<8x16xf32>
    %14 = tpu.concatenate %13, %5 in 1 : vector<8x16xf32>, vector<8x32xf32> -> vector<8x48xf32>
    %c0_8 = arith.constant 0 : index
    %c0_9 = arith.constant 0 : index
    %15 = vector.load %arg5[%c0_8, %c0_9] : memref<8x48xf32, #tpu.memory_space<vmem>>, vector<8x48xf32>
    tpu.vector_store %arg5[%c0_8, %c0_9], %14 {strides = array<i32>} : memref<8x48xf32, #tpu.memory_space<vmem>>, vector<8x48xf32>,
    return
  }
  func.func @transform_0(%arg0: i32) -> (i32, i32) {
    %c0_i32 = arith.constant 0 : i32
    %c0_i32_0 = arith.constant 0 : i32
    return %arg0, %c0_i32 : i32, i32
  }
  func.func @transform_1(%arg0: i32) -> (i32, i32) {
    %c0_i32 = arith.constant 0 : i32
    %c0_i32_0 = arith.constant 0 : i32
    %c0_i32_1 = arith.constant 0 : i32
    return %c0_i32, %c0_i32_0 : i32, i32
  }
  func.func @transform_2(%arg0: i32) -> (i32, i32) {
    %c0_i32 = arith.constant 0 : i32
    %c0_i32_0 = arith.constant 0 : i32
    %c0_i32_1 = arith.constant 0 : i32
    return %c0_i32, %c0_i32_0 : i32, i32
  }
  func.func @transform_3(%arg0: i32) -> (i32, i32) {
    %c0_i32 = arith.constant 0 : i32
    %c0_i32_0 = arith.constant 0 : i32
    return %arg0, %c0_i32 : i32, i32
  }
  func.func @transform_4(%arg0: i32) -> (i32, i32) {
    %c0_i32 = arith.constant 0 : i32
    %c0_i32_0 = arith.constant 0 : i32
    return %arg0, %c0_i32 : i32, i32
  }
}

</mosaic_0001>

<bundles_post_ra>
// kernel: tpu_custom_call.1
= control target key start
LH: loop header
LB: loop body
LE: loop exit
PB: predicated region body
PF: predicated region fallthrough
CT: control target
= control target key end

     0   :  { %9 = vsyncpa [#allocation3], 0  ;;  %s356_s0 = inlined_call_operand.hbm [shape: f32[8,32], index: 0, kind: input, shape index: {}]   ;;  %s357_s1 = inlined_call_operand.hbm [shape: f32[32,32], index: 1, kind: input, shape index: {}]   ;;  %s358_s2 = inlined_call_operand.vmem [shape: f32[1,32], index: 2, kind: input, shape index: {}]   ;;  %s359_s3 = inlined_call_operand.vmem [shape: f32[8,16], index: 3, kind: input, shape index: {}]   ;;  %s360_s4 = inlined_call_operand.hbm [shape: f32[8,48], index: 4, kind: output, shape index: {}]  }
   0x1   :  { %10 = vsyncpa [#allocation6], 0 }
   0x2   :  { %11 = vsyncpa [#allocation4], 0  ;;  %s272_s15 = smov [#allocation2]   ;;  %s273_s17 = smov [#allocation5]  }
   0x3   :  { %s18_s16 = sshll.u32 %s272_s15, 4  ;;  %s27_s18 = sshll.u32 %s273_s17, 4  ;;  %s19_s16 = int_to_ptr.vmem [resolvable:$true] %s18_s16  ;;  %s307_s18 = int_to_ptr.vmem [resolvable:$true] %s27_s18 }
   0x4   :  { %s200_s21 = scalar_lea.hbm %s356_s0, 128 }
   0x5   :  { %p201_p0 = scmp.ne.s32.totalorder %s356_s0, %s200_s21  ;;  %p204_p1 = scmp.lt.u32.totalorder %s200_s21, %s356_s0 }
   0x7   :  { %p206_p2 = pnand %p204_p1, %p201_p0 }
   0x9   :  { %209 = shalt.err (!%p206_p2)
}
   0xa   :  { %s210_s26 = scalar_lea.vmem %s19_s16, 128  ;;  %p215_p4 = scmp.lt.s32.totalorder %s19_s16, %s19_s16 }
   0xb   :  { %p211_p3 = scmp.ne.s32.totalorder %s19_s16, %s210_s26  ;;  %p216_p5 = scmp.lt.s32.totalorder %s210_s26, %s210_s26 }
   0xd   :  { %p217_p6 = por %p216_p5, %p215_p4 }
   0xf   :  { %p218_p7 = pnand %p217_p6, %p211_p3 }
  0x11   :  { %221 = shalt.err (!%p218_p7)
}
  0x12   :  { %21 = dma.hbm_to_vmem [thread:$0]  %s356_s0, 128, %s19_s16, [#allocation3]  }
  0x13   :  { %s222_s5 = scalar_lea.hbm %s357_s1, 512 }
  0x14   :  { %p223_p8 = scmp.ne.s32.totalorder %s357_s1, %s222_s5  ;;  %p226_p9 = scmp.lt.u32.totalorder %s222_s5, %s357_s1 }
  0x16   :  { %p228_p10 = pnand %p226_p9, %p223_p8 }
  0x18   :  { %231 = shalt.err (!%p228_p10)
}
  0x19   :  { %s232_s10 = scalar_lea.vmem %s307_s18, 512  ;;  %p237_p12 = scmp.lt.s32.totalorder %s307_s18, %s307_s18 }
  0x1a   :  { %p233_p11 = scmp.ne.s32.totalorder %s307_s18, %s232_s10  ;;  %p238_p13 = scmp.lt.s32.totalorder %s232_s10, %s232_s10 }
  0x1c   :  { %p239_p0 = por %p238_p13, %p237_p12 }
  0x1e   :  { %p240_p1 = pnand %p239_p0, %p233_p11 }
  0x20   :  { %243 = shalt.err (!%p240_p1)
}
  0x21   :  { %s274_s0 = smov 128   ;;  %s275_s11 = smov 8  }
  0x22   :  { %33 = dma.hbm_to_vmem [thread:$0]  %s357_s1, 512, %s307_s18, [#allocation6], %s274_s0, %s274_s0, %s275_s11  }
  0x23   :  { %266 = dma.done.wait [#allocation3], 128  }
  0x24   :  { %267 = vsyncadd [#allocation3], 4294967168 }
  0x25   :  { %268 = dma.done.wait [#allocation6], 512  }
  0x26   :  { %269 = vsyncadd [#allocation6], 4294966784  ;;  %v276_v0 = vmov 0.0|0.0   ;;  %vm277_vm0 = vmmov 0   ;;  %v278_v1 = vmov 0.0   ;;  %v45_v2 = vld [vmem:[#allocation5] sm:$0xff] }
  0x27   :  { %182 = vmatprep.subr.bf16.mxu0 %v276_v0  ;;  %179 = vmatprep.mubr.msk.f32.mxu0 %vm277_vm0, %v278_v1  ;;  %v46_v3 = vld [vmem:[#allocation5 + $0x8] sm:$0xff]  ;;  %v47_v4 = vld [vmem:[#allocation5 + $0x10] sm:$0xff]  ;;  %v48_v6 = vld [vmem:[#allocation5 + $0x18] sm:$0xff]  ;;  %vm56_vm1 = vcmask 261120   ;;  %s279_s15 = smov 112   ;;  %s280_s16 = smov 16  }
  0x28   :  { %v183_v5 = vpack.c.bf16 %v46_v3, %v45_v2  ;;  %v186_v7 = vpack.c.bf16 %v48_v6, %v47_v4  ;;  %v44_v8 = vld [vmem:[#allocation2] sm:$0xff]  ;;  %s281_s19 = smov [#allocation7]   ;;  %vm144_vm2 = vcmask 130048   ;;  %vm146_vm3 = vcmask 392192  }
  0x29   :  { %v164_v9 = vld [vmem:[%s358_s2] ss:$0 sm:$0xff]  ;;  %s154_s20 = sshll.u32 %s281_s19, 4  ;;  %s155_s20 = int_to_ptr.vmem [resolvable:$true] %s154_s20 }
  0x2a   :  { %184 = vmatpush3.bf16.msra.mxu0 %v183_v5  ;;  %v133_v16 = vld [vmem:[%s359_s3] sm:$0xff]  ;;  %s244_s2 = scalar_lea.vmem %s155_s20, 128  ;;  %p249_p3 = scmp.lt.s32.totalorder %s155_s20, %s155_s20 }
  0x2b   :  { %185 = vmatprep.subr.bf16.mxu0 %v276_v0  ;;  %p245_p2 = scmp.ne.s32.totalorder %s155_s20, %s244_s2  ;;  %p250_p4 = scmp.lt.s32.totalorder %s244_s2, %s244_s2 }
  0x2d   :  { %p251_p5 = por %p250_p4, %p249_p3 }
  0x2e   :  { %187 = vmatpush3.bf16.msra.mxu0 %v186_v7 }
  0x2f   :  { %p252_p6 = pnand %p251_p5, %p245_p2 }
  0x31   :  { %180 = vmatmul.mubr.msk.f32.vlgmr.msra.gmra.mrb[0].mxu0 %vm56_vm1, %v44_v8 }
 0x104   :  { %v126_v10 = vpop.f32.mrb[0].mxu0 }
 0x105   :  { %v127_v11 = vadd.f32 %v164_v9, %v126_v10  ;;  %v181_v12 = vpop.f32.mrb[1].mxu0 }
 0x107   :  { %v130_v13 = vmul.f32 0.5, %v127_v11 }
 0x109   :  { %v131_v14 = vmul.f32 1.442695, %v130_v13 }
 0x10b   :  { %198 = vpow2.f32 %v131_v14 }
 0x115   :  { %v199_v15 = vpop.eup %198 }
 0x116   :  { %135 = vrot.lane.b32.xlu0 %v199_v15, %s279_s15 }
 0x11a   :  { %141 = vrot.lane.b32.xlu0 %v127_v11, %s280_s16 }
 0x188   :  { %v136_v17 = vpop.permute.xlu0 %135 }
 0x189   :  { %v138_v18 = vmul.f32 %v136_v17, %v133_v16 }
 0x18b   :  { %v139_v19 = vadd.f32 %v138_v18, %v127_v11 }
 0x18c   :  { %v142_v20 = vpop.permute.xlu0 %141 }
 0x18d   :  { %v145_v21 = vsel %vm144_vm2, %v139_v19, %v142_v20 }
 0x18e   :  { %147 = vst.msk [vmem:[#allocation7] sm:$0xff] %vm146_vm3, %v145_v21 }
 0x18f   :  { %255 = shalt.err (!%p252_p6)
}
 0x190   :  { %s256_s22 = scalar_lea.hbm %s360_s4, 128 }
 0x191   :  { %p257_p7 = scmp.ne.s32.totalorder %s360_s4, %s256_s22  ;;  %p260_p8 = scmp.lt.u32.totalorder %s256_s22, %s360_s4 }
 0x193   :  { %p262_p9 = pnand %p260_p8, %p257_p7 }
 0x195   :  { %265 = shalt.err (!%p262_p9)
}
 0x196   :  { %157 = dma.vmem_to_hbm [thread:$0]  %s155_s20, 128, %s360_s4, [#allocation4]  }
 0x197   :  { %270 = dma.done.wait [#allocation4], 128  }
 0x198   :  { %271 = vsyncadd [#allocation4], 4294967168 }
 0x199   :  { %161 = vsyncpa [#allocation3], 1 }
 0x19a   :  { %162 = vsyncpa [#allocation6], 1 }
 0x19b   :  { %163 = vsyncpa [#allocation4], 1 }

</bundles_post_ra>
